<compile_context>
chip_gen: v7x
topology: tpu7x:2x2x1
jax: 0.10.0
libtpu: 0.0.40
codegen_flags: <defaults>
</compile_context>

<pallas_src>
import functools

import jax
import jax.numpy as jnp
from jax.experimental import pallas as pl
from jax.experimental.pallas import tpu as pltpu


def _round_up(n: int, m: int) -> int:
    return ((n + m - 1) // m) * m


def _mlp_kernel(x_ref, w1_ref, b1_ref, w2_ref, b2_ref, o_ref):
    # Linear 1 (MXU, fp32 accumulate) + bias + ReLU (VPU epilogue).
    h = jnp.dot(x_ref[...], w1_ref[...], preferred_element_type=jnp.float32)
    h = jnp.maximum(h + b1_ref[...], 0.0)          # (Bp, Hp) + (1, Hp) broadcast
    # Linear 2 (MXU) + bias; lane-dense (Bp, Op) store.
    y = jnp.dot(h, w2_ref[...], preferred_element_type=jnp.float32) + b2_ref[...]
    o_ref[...] = y.astype(o_ref.dtype)


@functools.partial(jax.jit, static_argnames=())
def mlp_agent_forward(x, w1, b1, w2, b2):
    """Forward pass of MLPAgent.

    x : (B, C, H, W) or already-flat (B, D_in)  float32
    w1: (D_in, hidden)   (= torch W1.T)
    b1: (hidden,)
    w2: (hidden, out)    (= torch W2.T)
    b2: (out,)
    returns (B, out) float32
    """
    B = x.shape[0]
    x2d = x.reshape(B, -1).astype(jnp.float32)      # nn.Flatten (plain JAX glue)
    d_in, hidden = w1.shape
    out_dim = w2.shape[1]
    assert x2d.shape[1] == d_in

    # TPU-friendly padded sizes: sublane=8 for the batch dim, lane=128 for feature dims.
    Bp = _round_up(max(B, 8), 8)
    Dp = _round_up(d_in, 128)
    Hp = _round_up(hidden, 128)
    Op = _round_up(out_dim, 128)

    x_p = jnp.pad(x2d, ((0, Bp - B), (0, Dp - d_in)))
    w1_p = jnp.pad(w1.astype(jnp.float32), ((0, Dp - d_in), (0, Hp - hidden)))
    b1_p = jnp.pad(b1.astype(jnp.float32), (0, Hp - hidden)).reshape(1, Hp)
    w2_p = jnp.pad(w2.astype(jnp.float32), ((0, Hp - hidden), (0, Op - out_dim)))
    b2_p = jnp.pad(b2.astype(jnp.float32), (0, Op - out_dim)).reshape(1, Op)

    vmem_spec = pl.BlockSpec(memory_space=pltpu.MemorySpace.VMEM)
    out_p = pl.pallas_call(
        _mlp_kernel,
        out_shape=jax.ShapeDtypeStruct((Bp, Op), jnp.float32),
        in_specs=[vmem_spec, vmem_spec, vmem_spec, vmem_spec, vmem_spec],
        out_specs=vmem_spec,
    )(x_p, w1_p, b1_p, w2_p, b2_p)

    return out_p[:B, :out_dim]


if __name__ == "__main__":
    # Small shapes consistent with the module: image-like input flattened.
    B, C, H, W = 2, 4, 16, 16
    input_size = C * H * W          # 1024
    hidden_size = 32
    output_size = 10

    key = jax.random.PRNGKey(0)
    kx, k1, k2, k3, k4 = jax.random.split(key, 5)

    x = jax.random.normal(kx, (B, C, H, W), dtype=jnp.float32)

    # Deterministic parameter init (Kaiming-uniform-ish scale, like nn.Linear).
    lim1 = 1.0 / jnp.sqrt(jnp.float32(input_size))
    lim2 = 1.0 / jnp.sqrt(jnp.float32(hidden_size))
    w1 = jax.random.uniform(k1, (input_size, hidden_size), jnp.float32, -lim1, lim1)
    b1 = jax.random.uniform(k2, (hidden_size,), jnp.float32, -lim1, lim1)
    w2 = jax.random.uniform(k3, (hidden_size, output_size), jnp.float32, -lim2, lim2)
    b2 = jax.random.uniform(k4, (output_size,), jnp.float32, -lim2, lim2)

    out = mlp_agent_forward(x, w1, b1, w2, b2)
    out = jax.block_until_ready(out)

    # Pure-JAX reference check (same semantics as the torch module).
    x2d = x.reshape(B, -1)
    ref = jnp.maximum(x2d @ w1 + b1, 0.0) @ w2 + b2
    assert out.shape == (B, output_size)
    assert jnp.allclose(out, ref, atol=1e-4, rtol=1e-4), "mismatch vs reference"

    # TODO(synk): update_parameters / Adam optimizer step is training-time machinery
    # with no forward-pass Pallas equivalent; not translated.
    print("KERNEL_OK")
</pallas_src>

<mosaic_0001>
module attributes {stable_mosaic.version = 11 : i64} {
  func.func @_mlp_kernel(%arg0: memref<8x1024xf32, #tpu.memory_space<vmem>>, %arg1: memref<1024x128xf32, #tpu.memory_space<vmem>>, %arg2: memref<1x128xf32, #tpu.memory_space<vmem>>, %arg3: memref<128x128xf32, #tpu.memory_space<vmem>>, %arg4: memref<1x128xf32, #tpu.memory_space<vmem>>, %arg5: memref<8x128xf32, #tpu.memory_space<vmem>>) attributes {dimension_semantics = [], scalar_prefetch = 0 : i64, scratch_operands = 0 : i64, tpu.core_type = #tpu.core_type<tc>} {
    %c0 = arith.constant 0 : index
    %c0_0 = arith.constant 0 : index
    %0 = vector.load %arg0[%c0, %c0_0] : memref<8x1024xf32, #tpu.memory_space<vmem>>, vector<8x1024xf32>
    %c0_1 = arith.constant 0 : index
    %c0_2 = arith.constant 0 : index
    %1 = vector.load %arg1[%c0_1, %c0_2] : memref<1024x128xf32, #tpu.memory_space<vmem>>, vector<1024x128xf32>
    %cst = arith.constant dense<0.000000e+00> : vector<8x128xf32>
    %2 = tpu.matmul %0, %1, %cst {dimension_numbers = #tpu.dot_dimension_numbers<[1], [0], [0], [1], [0, 0, 1, 1], [], []>} : vector<8x1024xf32>, vector<1024x128xf32>, vector<8x128xf32> -> vector<8x128xf32>
    %c0_3 = arith.constant 0 : index
    %c0_4 = arith.constant 0 : index
    %3 = vector.load %arg2[%c0_3, %c0_4] : memref<1x128xf32, #tpu.memory_space<vmem>>, vector<1x128xf32>
    %4 = vector.broadcast %3 : vector<1x128xf32> to vector<8x128xf32>
    %5 = arith.addf %2, %4 : vector<8x128xf32>
    %cst_5 = arith.constant 0.000000e+00 : f32
    %6 = vector.broadcast %cst_5 : f32 to vector<8x128xf32>
    %7 = arith.maximumf %5, %6 : vector<8x128xf32>
    %c0_6 = arith.constant 0 : index
    %c0_7 = arith.constant 0 : index
    %8 = vector.load %arg3[%c0_6, %c0_7] : memref<128x128xf32, #tpu.memory_space<vmem>>, vector<128x128xf32>
    %cst_8 = arith.constant dense<0.000000e+00> : vector<8x128xf32>
    %9 = tpu.matmul %7, %8, %cst_8 {dimension_numbers = #tpu.dot_dimension_numbers<[1], [0], [0], [1], [0, 0, 1, 1], [], []>} : vector<8x128xf32>, vector<128x128xf32>, vector<8x128xf32> -> vector<8x128xf32>
    %c0_9 = arith.constant 0 : index
    %c0_10 = arith.constant 0 : index
    %10 = vector.load %arg4[%c0_9, %c0_10] : memref<1x128xf32, #tpu.memory_space<vmem>>, vector<1x128xf32>
    %11 = vector.broadcast %10 : vector<1x128xf32> to vector<8x128xf32>
    %12 = arith.addf %9, %11 : vector<8x128xf32>
    %c0_11 = arith.constant 0 : index
    %c0_12 = arith.constant 0 : index
    %13 = vector.load %arg5[%c0_11, %c0_12] : memref<8x128xf32, #tpu.memory_space<vmem>>, vector<8x128xf32>
    tpu.vector_store %arg5[%c0_11, %c0_12], %12 {strides = array<i32>} : memref<8x128xf32, #tpu.memory_space<vmem>>, vector<8x128xf32>,
    return
  }
}

</mosaic_0001>

<bundles_post_ra>
// kernel: mlp_agent_forward.1
= control target key start
LH: loop header
LB: loop body
LE: loop exit
PB: predicated region body
PF: predicated region fallthrough
CT: control target
= control target key end

     0   :  { %vm892_vm0 = vmmov 0   ;;  %s1389_s1 = inlined_call_operand.vmem [shape: f32[1024,128], index: 1, kind: input, shape index: {}]   ;;  %s1390_s0 = inlined_call_operand.vmem [shape: f32[8,1024], index: 0, kind: input, shape index: {}]   ;;  %s1391_s3 = inlined_call_operand.vmem [shape: f32[128,128], index: 3, kind: input, shape index: {}]   ;;  %s1392_s2 = inlined_call_operand.vmem [shape: f32[1,128], index: 2, kind: input, shape index: {}]   ;;  %s1393_s4 = inlined_call_operand.vmem [shape: f32[1,128], index: 4, kind: input, shape index: {}]   ;;  %s1394_s5 = inlined_call_operand.vmem [shape: f32[8,128], index: 5, kind: output, shape index: {}]  }
   0x1   :  { %v44_v0 = vld [vmem:[%s1389_s1 + $0x80] sm:$0xff]  ;;  %v45_v1 = vld [vmem:[%s1389_s1 + $0x88] sm:$0xff]  ;;  %v46_v11 = vld [vmem:[%s1389_s1 + $0x90] sm:$0xff] }
   0x2   :  { %v28_v2 = vld [vmem:[%s1389_s1] sm:$0xff]  ;;  %v736_v3 = vpack.c.bf16 %v45_v1, %v44_v0  ;;  %v29_v4 = vld [vmem:[%s1389_s1 + $0x8] sm:$0xff]  ;;  %v47_v13 = vld [vmem:[%s1389_s1 + $0x98] sm:$0xff] }
   0x3   :  { %v76_v5 = vld [vmem:[%s1389_s1 + $0x180] sm:$0xff]  ;;  %v77_v6 = vld [vmem:[%s1389_s1 + $0x188] sm:$0xff]  ;;  %v738_v7 = vpack.c.bf16 %v29_v4, %v28_v2  ;;  %v30_v14 = vld [vmem:[%s1389_s1 + $0x10] sm:$0xff]  ;;  %v740_v16 = vpack.c.bf16 %v47_v13, %v46_v11 }
   0x4   :  { %v768_v8 = vpack.c.bf16 %v77_v6, %v76_v5  ;;  %v60_v9 = vld [vmem:[%s1389_s1 + $0x100] sm:$0xff]  ;;  %v61_v10 = vld [vmem:[%s1389_s1 + $0x108] sm:$0xff]  ;;  %737 = vmatprep.subr.bf16.mxu0 %v736_v3  ;;  %v31_v15 = vld [vmem:[%s1389_s1 + $0x18] sm:$0xff] }
   0x5   :  { %v770_v12 = vpack.c.bf16 %v61_v10, %v60_v9  ;;  %739 = vmatpush3.bf16.msra.mxu0 %v738_v7  ;;  %v742_v17 = vpack.c.bf16 %v31_v15, %v30_v14  ;;  %v78_v18 = vld [vmem:[%s1389_s1 + $0x190] sm:$0xff]  ;;  %v79_v19 = vld [vmem:[%s1389_s1 + $0x198] sm:$0xff]  ;;  %v48_v23 = vld [vmem:[%s1389_s1 + $0xa0] sm:$0xff] }
   0x6   :  { %769 = vmatprep.subr.bf16.mxu1 %v768_v8  ;;  %v62_v20 = vld [vmem:[%s1389_s1 + $0x110] sm:$0xff]  ;;  %v772_v21 = vpack.c.bf16 %v79_v19, %v78_v18  ;;  %v63_v22 = vld [vmem:[%s1389_s1 + $0x118] sm:$0xff]  ;;  %v49_v24 = vld [vmem:[%s1389_s1 + $0xa8] sm:$0xff]  ;;  %741 = vmatprep.subr.bf16.mxu0 %v740_v16 }
   0x7   :  { %771 = vmatpush3.bf16.msra.mxu1 %v770_v12  ;;  %v774_v25 = vpack.c.bf16 %v63_v22, %v62_v20  ;;  %v744_v26 = vpack.c.bf16 %v49_v24, %v48_v23  ;;  %v32_v27 = vld [vmem:[%s1389_s1 + $0x20] sm:$0xff]  ;;  %v33_v28 = vld [vmem:[%s1389_s1 + $0x28] sm:$0xff]  ;;  %v50_v35 = vld [vmem:[%s1389_s1 + $0xb0] sm:$0xff] }
   0x8   :  { %v80_v29 = vld [vmem:[%s1389_s1 + $0x1a0] sm:$0xff]  ;;  %773 = vmatprep.subr.bf16.mxu1 %v772_v21  ;;  %v81_v30 = vld [vmem:[%s1389_s1 + $0x1a8] sm:$0xff]  ;;  %v746_v33 = vpack.c.bf16 %v33_v28, %v32_v27  ;;  %v51_v36 = vld [vmem:[%s1389_s1 + $0xb8] sm:$0xff] }
   0x9   :  { %v64_v31 = vld [vmem:[%s1389_s1 + $0x120] sm:$0xff]  ;;  %v65_v32 = vld [vmem:[%s1389_s1 + $0x128] sm:$0xff]  ;;  %743 = vmatpush3.bf16.msra.mxu0 %v742_v17  ;;  %v776_v34 = vpack.c.bf16 %v81_v30, %v80_v29  ;;  %v34_v37 = vld [vmem:[%s1389_s1 + $0x30] sm:$0xff]  ;;  %v748_v39 = vpack.c.bf16 %v51_v36, %v50_v35 }
   0xa   :  { %745 = vmatprep.subr.bf16.mxu0 %v744_v26  ;;  %v778_v38 = vpack.c.bf16 %v65_v32, %v64_v31  ;;  %v35_v40 = vld [vmem:[%s1389_s1 + $0x38] sm:$0xff]  ;;  %v82_v41 = vld [vmem:[%s1389_s1 + $0x1b0] sm:$0xff]  ;;  %v52_v46 = vld [vmem:[%s1389_s1 + $0xc0] sm:$0xff] }
   0xb   :  { %775 = vmatpush3.bf16.msra.mxu1 %v774_v25  ;;  %v83_v42 = vld [vmem:[%s1389_s1 + $0x1b8] sm:$0xff]  ;;  %v66_v44 = vld [vmem:[%s1389_s1 + $0x130] sm:$0xff]  ;;  %v53_v47 = vld [vmem:[%s1389_s1 + $0xc8] sm:$0xff]  ;;  %v750_v48 = vpack.c.bf16 %v35_v40, %v34_v37 }
   0xc   :  { %777 = vmatprep.subr.bf16.mxu1 %v776_v34  ;;  %v780_v43 = vpack.c.bf16 %v83_v42, %v82_v41  ;;  %v67_v45 = vld [vmem:[%s1389_s1 + $0x138] sm:$0xff]  ;;  %v84_v49 = vld [vmem:[%s1389_s1 + $0x1c0] sm:$0xff]  ;;  %v85_v50 = vld [vmem:[%s1389_s1 + $0x1c8] sm:$0xff]  ;;  %v752_v52 = vpack.c.bf16 %v53_v47, %v52_v46 }
   0xd   :  { %747 = vmatpush3.bf16.msra.mxu0 %v746_v33  ;;  %v782_v51 = vpack.c.bf16 %v67_v45, %v66_v44  ;;  %v36_v53 = vld [vmem:[%s1389_s1 + $0x40] sm:$0xff]  ;;  %v37_v54 = vld [vmem:[%s1389_s1 + $0x48] sm:$0xff]  ;;  %v784_v56 = vpack.c.bf16 %v85_v50, %v84_v49  ;;  %v54_v58 = vld [vmem:[%s1389_s1 + $0xd0] sm:$0xff] }
   0xe   :  { %749 = vmatprep.subr.bf16.mxu0 %v748_v39  ;;  %v68_v55 = vld [vmem:[%s1389_s1 + $0x140] sm:$0xff]  ;;  %v69_v57 = vld [vmem:[%s1389_s1 + $0x148] sm:$0xff]  ;;  %v55_v59 = vld [vmem:[%s1389_s1 + $0xd8] sm:$0xff]  ;;  %v754_v62 = vpack.c.bf16 %v37_v54, %v36_v53 }
   0xf   :  { %779 = vmatpush3.bf16.msra.mxu1 %v778_v38  ;;  %v86_v60 = vld [vmem:[%s1389_s1 + $0x1d0] sm:$0xff]  ;;  %v87_v61 = vld [vmem:[%s1389_s1 + $0x1d8] sm:$0xff]  ;;  %v786_v63 = vpack.c.bf16 %v69_v57, %v68_v55  ;;  %v756_v0 = vpack.c.bf16 %v55_v59, %v54_v58  ;;  %v56_v6 = vld [vmem:[%s1389_s1 + $0xe0] sm:$0xff] }
  0x10   :  { %781 = vmatprep.subr.bf16.mxu1 %v780_v43  ;;  %v38_v1 = vld [vmem:[%s1389_s1 + $0x50] sm:$0xff]  ;;  %v39_v2 = vld [vmem:[%s1389_s1 + $0x58] sm:$0xff]  ;;  %v788_v4 = vpack.c.bf16 %v87_v61, %v86_v60  ;;  %v57_v7 = vld [vmem:[%s1389_s1 + $0xe8] sm:$0xff] }
  0x11   :  { %751 = vmatpush3.bf16.msra.mxu0 %v750_v48  ;;  %v70_v3 = vld [vmem:[%s1389_s1 + $0x150] sm:$0xff]  ;;  %v71_v5 = vld [vmem:[%s1389_s1 + $0x158] sm:$0xff]  ;;  %v88_v8 = vld [vmem:[%s1389_s1 + $0x1e0] sm:$0xff]  ;;  %v758_v10 = vpack.c.bf16 %v39_v2, %v38_v1  ;;  %v760_v14 = vpack.c.bf16 %v57_v7, %v56_v6 }
  0x12   :  { %753 = vmatprep.subr.bf16.mxu0 %v752_v52  ;;  %v89_v9 = vld [vmem:[%s1389_s1 + $0x1e8] sm:$0xff]  ;;  %v40_v11 = vld [vmem:[%s1389_s1 + $0x60] sm:$0xff]  ;;  %v790_v13 = vpack.c.bf16 %v71_v5, %v70_v3  ;;  %v58_v19 = vld [vmem:[%s1389_s1 + $0xf0] sm:$0xff] }
  0x13   :  { %783 = vmatpush3.bf16.msra.mxu1 %v782_v51  ;;  %v41_v12 = vld [vmem:[%s1389_s1 + $0x68] sm:$0xff]  ;;  %v72_v15 = vld [vmem:[%s1389_s1 + $0x160] sm:$0xff]  ;;  %v792_v18 = vpack.c.bf16 %v89_v9, %v88_v8  ;;  %v59_v20 = vld [vmem:[%s1389_s1 + $0xf8] sm:$0xff] }
  0x14   :  { %785 = vmatprep.subr.bf16.mxu1 %v784_v56  ;;  %v73_v16 = vld [vmem:[%s1389_s1 + $0x168] sm:$0xff]  ;;  %v23_v21 = vld [vmem:[%s1390_s0 + $0x18] sm:$0xff]  ;;  %v90_v22 = vld [vmem:[%s1389_s1 + $0x1f0] sm:$0xff]  ;;  %v762_v24 = vpack.c.bf16 %v41_v12, %v40_v11  ;;  %v764_v26 = vpack.c.bf16 %v59_v20, %v58_v19 }
  0x15   :  { %755 = vmatpush3.bf16.msra.mxu0 %v754_v62  ;;  %v21_v17 = vld [vmem:[%s1390_s0 + $0x8] sm:$0xff]  ;;  %v91_v23 = vld [vmem:[%s1389_s1 + $0x1f8] sm:$0xff]  ;;  %297 = vmatprep.mubr.f32.mxu1 %v23_v21  ;;  %v794_v25 = vpack.c.bf16 %v73_v16, %v72_v15  ;;  %v42_v27 = vld [vmem:[%s1389_s1 + $0x70] sm:$0xff] }
  0x16   :  { %757 = vmatprep.subr.bf16.mxu0 %v756_v0  ;;  %227 = vmatprep.mubr.f32.mxu0 %v21_v17  ;;  %v43_v28 = vld [vmem:[%s1389_s1 + $0x78] sm:$0xff]  ;;  %v74_v29 = vld [vmem:[%s1389_s1 + $0x170] sm:$0xff]  ;;  %v796_v30 = vpack.c.bf16 %v91_v23, %v90_v22  ;;  %v108_v32 = vld [vmem:[%s1389_s1 + $0x280] sm:$0xff] }
  0x17   :  { %787 = vmatpush3.bf16.msra.mxu1 %v786_v63  ;;  %v75_v31 = vld [vmem:[%s1389_s1 + $0x178] sm:$0xff]  ;;  %v109_v33 = vld [vmem:[%s1389_s1 + $0x288] sm:$0xff]  ;;  %v140_v34 = vld [vmem:[%s1389_s1 + $0x380] sm:$0xff]  ;;  %v766_v36 = vpack.c.bf16 %v43_v28, %v42_v27 }
  0x18   :  { %789 = vmatprep.subr.bf16.mxu1 %v788_v4  ;;  %v141_v35 = vld [vmem:[%s1389_s1 + $0x388] sm:$0xff]  ;;  %v798_v37 = vpack.c.bf16 %v75_v31, %v74_v29  ;;  %v800_v38 = vpack.c.bf16 %v109_v33, %v108_v32  ;;  %v92_v39 = vld [vmem:[%s1389_s1 + $0x200] sm:$0xff]  ;;  %v110_v44 = vld [vmem:[%s1389_s1 + $0x290] sm:$0xff] }
  0x19   :  { %759 = vmatpush3.bf16.msra.mxu0 %v758_v10  ;;  %v93_v40 = vld [vmem:[%s1389_s1 + $0x208] sm:$0xff]  ;;  %v124_v41 = vld [vmem:[%s1389_s1 + $0x300] sm:$0xff]  ;;  %v832_v42 = vpack.c.bf16 %v141_v35, %v140_v34  ;;  %v111_v45 = vld [vmem:[%s1389_s1 + $0x298] sm:$0xff] }
  0x1a   :  { %761 = vmatprep.subr.bf16.mxu0 %v760_v14  ;;  %v125_v43 = vld [vmem:[%s1389_s1 + $0x308] sm:$0xff]  ;;  %v142_v46 = vld [vmem:[%s1389_s1 + $0x390] sm:$0xff]  ;;  %v143_v47 = vld [vmem:[%s1389_s1 + $0x398] sm:$0xff]  ;;  %v802_v49 = vpack.c.bf16 %v93_v40, %v92_v39  ;;  %v804_v52 = vpack.c.bf16 %v111_v45, %v110_v44 }
  0x1b   :  { %791 = vmatpush3.bf16.msra.mxu1 %v790_v13  ;;  %v20_v48 = vld [vmem:[%s1390_s0] sm:$0xff]  ;;  %v22_v50 = vld [vmem:[%s1390_s0 + $0x10] sm:$0xff]  ;;  %v834_v51 = vpack.c.bf16 %v125_v43, %v124_v41  ;;  %v95_v54 = vld [vmem:[%s1389_s1 + $0x218] sm:$0xff]  ;;  %v836_v56 = vpack.c.bf16 %v143_v47, %v142_v46 }
  0x1c   :  { %793 = vmatprep.subr.bf16.mxu1 %v792_v18  ;;  %v94_v53 = vld [vmem:[%s1389_s1 + $0x210] sm:$0xff]  ;;  %v127_v57 = vld [vmem:[%s1389_s1 + $0x318] sm:$0xff]  ;;  %v112_v58 = vld [vmem:[%s1389_s1 + $0x2a0] sm:$0xff] }
  0x1d   :  { %763 = vmatpush3.bf16.msra.mxu0 %v762_v24  ;;  %v126_v55 = vld [vmem:[%s1389_s1 + $0x310] sm:$0xff]  ;;  %v113_v59 = vld [vmem:[%s1389_s1 + $0x2a8] sm:$0xff]  ;;  %v144_v60 = vld [vmem:[%s1389_s1 + $0x3a0] sm:$0xff]  ;;  %v806_v62 = vpack.c.bf16 %v95_v54, %v94_v53 }
  0x1e   :  { %765 = vmatprep.subr.bf16.mxu0 %v764_v26  ;;  %v145_v61 = vld [vmem:[%s1389_s1 + $0x3a8] sm:$0xff]  ;;  %v838_v63 = vpack.c.bf16 %v127_v57, %v126_v55  ;;  %v808_v0 = vpack.c.bf16 %v113_v59, %v112_v58  ;;  %v96_v1 = vld [vmem:[%s1389_s1 + $0x220] sm:$0xff]  ;;  %v114_v6 = vld [vmem:[%s1389_s1 + $0x2b0] sm:$0xff] }
  0x1f   :  { %795 = vmatpush3.bf16.msra.mxu1 %v794_v25  ;;  %v97_v2 = vld [vmem:[%s1389_s1 + $0x228] sm:$0xff]  ;;  %v128_v3 = vld [vmem:[%s1389_s1 + $0x320] sm:$0xff]  ;;  %v840_v4 = vpack.c.bf16 %v145_v61, %v144_v60  ;;  %v115_v7 = vld [vmem:[%s1389_s1 + $0x2b8] sm:$0xff] }
  0x20   :  { %797 = vmatprep.subr.bf16.mxu1 %v796_v30  ;;  %v129_v5 = vld [vmem:[%s1389_s1 + $0x328] sm:$0xff]  ;;  %v146_v8 = vld [vmem:[%s1389_s1 + $0x3b0] sm:$0xff]  ;;  %v147_v9 = vld [vmem:[%s1389_s1 + $0x3b8] sm:$0xff]  ;;  %v810_v10 = vpack.c.bf16 %v97_v2, %v96_v1  ;;  %v812_v12 = vpack.c.bf16 %v115_v7, %v114_v6 }
  0x21   :  { %767 = vmatpush3.bf16.msra.mxu0 %v766_v36  ;;  %v842_v11 = vpack.c.bf16 %v129_v5, %v128_v3  ;;  %v98_v13 = vld [vmem:[%s1389_s1 + $0x230] sm:$0xff]  ;;  %v99_v14 = vld [vmem:[%s1389_s1 + $0x238] sm:$0xff]  ;;  %v844_v16 = vpack.c.bf16 %v147_v9, %v146_v8  ;;  %v116_v18 = vld [vmem:[%s1389_s1 + $0x2c0] sm:$0xff]  ;;  %v891_v8 = vmov 0.0|0.0  }
  0x22   :  { %801 = vmatprep.subr.bf16.mxu0 %v800_v38  ;;  %v130_v15 = vld [vmem:[%s1389_s1 + $0x330] sm:$0xff]  ;;  %v131_v17 = vld [vmem:[%s1389_s1 + $0x338] sm:$0xff]  ;;  %v117_v19 = vld [vmem:[%s1389_s1 + $0x2c8] sm:$0xff]  ;;  %v814_v22 = vpack.c.bf16 %v99_v14, %v98_v13 }
  0x23   :  { %799 = vmatpush3.bf16.msra.mxu1 %v798_v37  ;;  %v148_v20 = vld [vmem:[%s1389_s1 + $0x3c0] sm:$0xff]  ;;  %v149_v21 = vld [vmem:[%s1389_s1 + $0x3c8] sm:$0xff]  ;;  %v27_v24 = vld [vmem:[%s1390_s0 + $0x38] sm:$0xff]  ;;  %v846_v25 = vpack.c.bf16 %v131_v17, %v130_v15  ;;  %v816_v26 = vpack.c.bf16 %v117_v19, %v116_v18 }
  0x24   :  { %833 = vmatprep.subr.bf16.mxu1 %v832_v42  ;;  %228 = vmatmul.mubr.f32.vlgmr.msra.gmra.mrb[0].mxu0 %v20_v48  ;;  %v25_v23 = vld [vmem:[%s1390_s0 + $0x28] sm:$0xff]  ;;  %v100_v27 = vld [vmem:[%s1389_s1 + $0x240] sm:$0xff]  ;;  %v848_v30 = vpack.c.bf16 %v149_v21, %v148_v20  ;;  %v118_v32 = vld [vmem:[%s1389_s1 + $0x2d0] sm:$0xff] }
  0x25   :  { %803 = vmatpush3.bf16.msra.mxu0 %v802_v49  ;;  %v101_v28 = vld [vmem:[%s1389_s1 + $0x248] sm:$0xff]  ;;  %v132_v29 = vld [vmem:[%s1389_s1 + $0x340] sm:$0xff]  ;;  %v119_v33 = vld [vmem:[%s1389_s1 + $0x2d8] sm:$0xff]  ;;  %367 = vmatprep.mubr.f32.mxu0 %v25_v23 }
  0x26   :  { %298 = vmatmul.mubr.f32.vlgmr.msra.gmra.mrb[0].mxu1 %v22_v50  ;;  %805 = vmatprep.subr.bf16.mxu0 %v804_v52  ;;  %v133_v31 = vld [vmem:[%s1389_s1 + $0x348] sm:$0xff]  ;;  %v150_v34 = vld [vmem:[%s1389_s1 + $0x3d0] sm:$0xff]  ;;  %v151_v35 = vld [vmem:[%s1389_s1 + $0x3d8] sm:$0xff]  ;;  %v818_v36 = vpack.c.bf16 %v101_v28, %v100_v27  ;;  %v820_v38 = vpack.c.bf16 %v119_v33, %v118_v32  ;;  %v893_v33 = vmov 0.0  }
  0x27   :  { %835 = vmatpush3.bf16.msra.mxu1 %v834_v51  ;;  %437 = vmatprep.mubr.f32.mxu1 %v27_v24  ;;  %v850_v37 = vpack.c.bf16 %v133_v31, %v132_v29  ;;  %v102_v39 = vld [vmem:[%s1389_s1 + $0x250] sm:$0xff]  ;;  %v103_v40 = vld [vmem:[%s1389_s1 + $0x258] sm:$0xff]  ;;  %v852_v42 = vpack.c.bf16 %v151_v35, %v150_v34  ;;  %v120_v44 = vld [vmem:[%s1389_s1 + $0x2e0] sm:$0xff] }
  0x28   :  { %837 = vmatprep.subr.bf16.mxu1 %v836_v56  ;;  %v134_v41 = vld [vmem:[%s1389_s1 + $0x350] sm:$0xff]  ;;  %v135_v43 = vld [vmem:[%s1389_s1 + $0x358] sm:$0xff]  ;;  %v121_v45 = vld [vmem:[%s1389_s1 + $0x2e8] sm:$0xff]  ;;  %v822_v48 = vpack.c.bf16 %v103_v40, %v102_v39 }
  0x29   :  { %807 = vmatpush3.bf16.msra.mxu0 %v806_v62  ;;  %v152_v46 = vld [vmem:[%s1389_s1 + $0x3e0] sm:$0xff]  ;;  %v153_v47 = vld [vmem:[%s1389_s1 + $0x3e8] sm:$0xff]  ;;  %v854_v49 = vpack.c.bf16 %v135_v43, %v134_v41  ;;  %v824_v50 = vpack.c.bf16 %v121_v45, %v120_v44  ;;  %v122_v56 = vld [vmem:[%s1389_s1 + $0x2f0] sm:$0xff] }
  0x2a   :  { %809 = vmatprep.subr.bf16.mxu0 %v808_v0  ;;  %v104_v51 = vld [vmem:[%s1389_s1 + $0x260] sm:$0xff]  ;;  %v105_v52 = vld [vmem:[%s1389_s1 + $0x268] sm:$0xff]  ;;  %v856_v54 = vpack.c.bf16 %v153_v47, %v152_v46  ;;  %v123_v57 = vld [vmem:[%s1389_s1 + $0x2f8] sm:$0xff] }
  0x2b   :  { %839 = vmatpush3.bf16.msra.mxu1 %v838_v63  ;;  %v136_v53 = vld [vmem:[%s1389_s1 + $0x360] sm:$0xff]  ;;  %v137_v55 = vld [vmem:[%s1389_s1 + $0x368] sm:$0xff]  ;;  %v154_v58 = vld [vmem:[%s1389_s1 + $0x3f0] sm:$0xff]  ;;  %v826_v60 = vpack.c.bf16 %v105_v52, %v104_v51  ;;  %v828_v62 = vpack.c.bf16 %v123_v57, %v122_v56 }
  0x2c   :  { %841 = vmatprep.subr.bf16.mxu1 %v840_v4  ;;  %v155_v59 = vld [vmem:[%s1389_s1 + $0x3f8] sm:$0xff]  ;;  %v858_v61 = vpack.c.bf16 %v137_v55, %v136_v53  ;;  %v106_v63 = vld [vmem:[%s1389_s1 + $0x270] sm:$0xff]  ;;  %v24_v6 = vld [vmem:[%s1390_s0 + $0x20] sm:$0xff] }
  0x2d   :  { %811 = vmatpush3.bf16.msra.mxu0 %v810_v10  ;;  %v107_v0 = vld [vmem:[%s1389_s1 + $0x278] sm:$0xff]  ;;  %v860_v1 = vpack.c.bf16 %v155_v59, %v154_v58  ;;  %v138_v2 = vld [vmem:[%s1389_s1 + $0x370] sm:$0xff]  ;;  %v444_v9 = vld [vmem:[%s1391_s3] sm:$0xff] }
  0x2e   :  { %813 = vmatprep.subr.bf16.mxu0 %v812_v12  ;;  %v139_v3 = vld [vmem:[%s1389_s1 + $0x378] sm:$0xff]  ;;  %v830_v4 = vpack.c.bf16 %v107_v0, %v106_v63  ;;  %v26_v7 = vld [vmem:[%s1390_s0 + $0x30] sm:$0xff]  ;;  %v445_v10 = vld [vmem:[%s1391_s3 + $0x8] sm:$0xff] }
  0x2f   :  { %843 = vmatpush3.bf16.msra.mxu1 %v842_v11  ;;  %v862_v5 = vpack.c.bf16 %v139_v3, %v138_v2  ;;  %v446_v11 = vld [vmem:[%s1391_s3 + $0x10] sm:$0xff]  ;;  %v865_v12 = vpack.c.bf16 %v445_v10, %v444_v9  ;;  %v447_v13 = vld [vmem:[%s1391_s3 + $0x18] sm:$0xff]  ;;  %v448_v15 = vld [vmem:[%s1391_s3 + $0x20] sm:$0xff] }
  0x30   :  { %845 = vmatprep.subr.bf16.mxu1 %v844_v16  ;;  %v868_v14 = vpack.c.bf16 %v447_v13, %v446_v11  ;;  %v449_v16 = vld [vmem:[%s1391_s3 + $0x28] sm:$0xff]  ;;  %v450_v18 = vld [vmem:[%s1391_s3 + $0x30] sm:$0xff]  ;;  %v451_v19 = vld [vmem:[%s1391_s3 + $0x38] sm:$0xff] }
  0x31   :  { %815 = vmatpush3.bf16.msra.mxu0 %v814_v22  ;;  %v871_v17 = vpack.c.bf16 %v449_v16, %v448_v15  ;;  %v874_v20 = vpack.c.bf16 %v451_v19, %v450_v18  ;;  %v452_v21 = vld [vmem:[%s1391_s3 + $0x40] sm:$0xff]  ;;  %v453_v22 = vld [vmem:[%s1391_s3 + $0x48] sm:$0xff]  ;;  %v454_v24 = vld [vmem:[%s1391_s3 + $0x50] sm:$0xff] }
  0x32   :  { %817 = vmatprep.subr.bf16.mxu0 %v816_v26  ;;  %v877_v23 = vpack.c.bf16 %v453_v22, %v452_v21  ;;  %v456_v27 = vld [vmem:[%s1391_s3 + $0x60] sm:$0xff]  ;;  %v457_v28 = vld [vmem:[%s1391_s3 + $0x68] sm:$0xff]  ;;  %v459_v31 = vld [vmem:[%s1391_s3 + $0x78] sm:$0xff] }
  0x33   :  { %847 = vmatpush3.bf16.msra.mxu1 %v846_v25  ;;  %v455_v25 = vld [vmem:[%s1391_s3 + $0x58] sm:$0xff]  ;;  %v883_v29 = vpack.c.bf16 %v457_v28, %v456_v27  ;;  %v542_v35 = vld [vmem:[%s1392_s2] ss:$0 sm:$0xff] }
  0x34   :  { %849 = vmatprep.subr.bf16.mxu1 %v848_v30  ;;  %v880_v26 = vpack.c.bf16 %v455_v25, %v454_v24  ;;  %v458_v30 = vld [vmem:[%s1391_s3 + $0x70] sm:$0xff]  ;;  %v543_v52 = vld [vmem:[%s1393_s4] ss:$0 sm:$0xff] }
  0x35   :  { %819 = vmatpush3.bf16.msra.mxu0 %v818_v36  ;;  %v886_v32 = vpack.c.bf16 %v459_v31, %v458_v30 }
  0x36   :  { %821 = vmatprep.subr.bf16.mxu0 %v820_v38 }
  0x37   :  { %851 = vmatpush3.bf16.msra.mxu1 %v850_v37 }
  0x38   :  { %853 = vmatprep.subr.bf16.mxu1 %v852_v42 }
  0x39   :  { %823 = vmatpush3.bf16.msra.mxu0 %v822_v48 }
  0x3a   :  { %825 = vmatprep.subr.bf16.mxu0 %v824_v50 }
  0x3b   :  { %855 = vmatpush3.bf16.msra.mxu1 %v854_v49 }
  0x3c   :  { %857 = vmatprep.subr.bf16.mxu1 %v856_v54 }
  0x3d   :  { %827 = vmatpush3.bf16.msra.mxu0 %v826_v60 }
  0x3e   :  { %829 = vmatprep.subr.bf16.mxu0 %v828_v62 }
  0x3f   :  { %859 = vmatpush3.bf16.msra.mxu1 %v858_v61 }
  0x40   :  { %861 = vmatprep.subr.bf16.mxu1 %v860_v1 }
  0x41   :  { %831 = vmatpush3.bf16.msra.mxu0 %v830_v4 }
  0x42   :  { %864 = vmatprep.subr.bf16.mxu0 %v891_v8 }
  0x43   :  { %863 = vmatpush3.bf16.msra.mxu1 %v862_v5 }
  0x44   :  { %368 = vmatmul.mubr.f32.vlgmr.msra.gmra.mrb[2].mxu0 %v24_v6 }
  0x45   :  { %866 = vmatpush3.bf16.msra.mxu0 %v865_v12  ;;  %733 = vmatprep.mubr.msk.f32.mxu0 %vm892_vm0, %v893_v33 }
  0x46   :  { %438 = vmatmul.mubr.f32.vlgmr.msra.gmra.mrb[2].mxu1 %v26_v7  ;;  %867 = vmatprep.subr.bf16.mxu0 %v891_v8 }
  0x49   :  { %869 = vmatpush3.bf16.msra.mxu0 %v868_v14 }
  0x4a   :  { %870 = vmatprep.subr.bf16.mxu0 %v891_v8 }
  0x4d   :  { %872 = vmatpush3.bf16.msra.mxu0 %v871_v17 }
  0x4e   :  { %873 = vmatprep.subr.bf16.mxu0 %v891_v8 }
  0x51   :  { %875 = vmatpush3.bf16.msra.mxu0 %v874_v20 }
  0x52   :  { %876 = vmatprep.subr.bf16.mxu0 %v891_v8 }
  0x55   :  { %878 = vmatpush3.bf16.msra.mxu0 %v877_v23 }
  0x56   :  { %879 = vmatprep.subr.bf16.mxu0 %v891_v8 }
  0x59   :  { %881 = vmatpush3.bf16.msra.mxu0 %v880_v26 }
  0x5a   :  { %882 = vmatprep.subr.bf16.mxu0 %v891_v8 }
  0x5d   :  { %884 = vmatpush3.bf16.msra.mxu0 %v883_v29 }
  0x5e   :  { %885 = vmatprep.subr.bf16.mxu0 %v891_v8 }
  0x61   :  { %887 = vmatpush3.bf16.msra.mxu0 %v886_v32 }
  0xf7   :  { %v576_v34 = vpop.f32.mrb[0].mxu0 }
  0xf8   :  { %v577_v36 = vpop.f32.mrb[1].mxu0 }
  0xf9   :  { %v611_v37 = vpop.f32.mrb[0].mxu1  ;;  %v578_v38 = vadd.f32 %v577_v36, %v576_v34 }
  0xfa   :  { %v612_v39 = vpop.f32.mrb[1].mxu1 }
  0xfb   :  { %v613_v40 = vadd.f32 %v612_v39, %v611_v37  ;;  %v230_v41 = vadd.f32 %v578_v38, %v542_v35 }
  0xfd   :  { %v300_v42 = vadd.f32 %v613_v40, %v230_v41 }
 0x117   :  { %v646_v43 = vpop.f32.mrb[2].mxu0 }
 0x118   :  { %v647_v44 = vpop.f32.mrb[3].mxu0 }
 0x119   :  { %v681_v45 = vpop.f32.mrb[2].mxu1  ;;  %v648_v46 = vadd.f32 %v647_v44, %v646_v43 }
 0x11a   :  { %v682_v47 = vpop.f32.mrb[3].mxu1 }
 0x11b   :  { %v683_v48 = vadd.f32 %v682_v47, %v681_v45  ;;  %v370_v49 = vadd.f32 %v648_v46, %v300_v42 }
 0x11d   :  { %v440_v50 = vadd.f32 %v683_v48, %v370_v49 }
 0x11f   :  { %v443_v51 = vmax.f32 %v440_v50, 0.0 }
 0x121   :  { %734 = vmatmul.mubr.f32.vlgmr.msra.gmra.mrb[4].mxu0 %v443_v51 }
 0x1f4   :  { %v533_v53 = vpop.f32.mrb[4].mxu0 }
 0x1f5   :  { %v534_v54 = vadd.f32 %v543_v52, %v533_v53  ;;  %v735_v55 = vpop.f32.mrb[5].mxu0 }
 0x1f7   :  { %537 = vst [vmem:[%s1394_s5] sm:$0xff] %v534_v54 }

</bundles_post_ra>
